<compile_context>
chip_gen: v6e
topology: v6e:2x2x1
jax: 0.10.0
libtpu: 0.0.40
codegen_flags: <defaults>
</compile_context>

<pallas_src>
import functools

import jax
import jax.numpy as jnp
from jax.experimental import pallas as pl
from jax.experimental.pallas import tpu as pltpu


def _round_up(a: int, b: int) -> int:
    return ((a + b - 1) // b) * b


def _label_smoothed_ce_kernel(x_ref, y_ref, loss_ref, *, lam: float):
    # x_ref: (TILE_N, C) wire dtype; y_ref: (TILE_N, 1) int32; loss_ref: (TILE_N, 1) f32
    x = x_ref[...]                                    # stays in wire dtype (f32 or bf16)
    y = y_ref[...]                                    # (TILE_N, 1)
    tn, c = x.shape

    # One subtraction pass; all three row reductions read xm.
    m = jnp.max(x, axis=1, keepdims=True)             # (TILE_N, 1), wire dtype
    xm = x - m                                        # (TILE_N, C), wire dtype

    # (1, C) iota broadcast against y in the compare -> no full-tile iota per step.
    col_ids = jax.lax.broadcasted_iota(jnp.int32, (1, c), 1)
    hit = col_ids == y                                # (TILE_N, C) bool via broadcast

    # f32 accumulation; casts are fused per-vreg (no-ops for f32 inputs).
    sum_exp = jnp.sum(jnp.exp(xm).astype(jnp.float32), axis=1, keepdims=True)
    sum_xm = jnp.sum(xm.astype(jnp.float32), axis=1, keepdims=True)
    xm_y = jnp.sum(jnp.where(hit, xm, 0).astype(jnp.float32), axis=1, keepdims=True)

    lse = jnp.log(sum_exp)                            # log(sum_c exp(x - m))

    # loss_i = -(lam/C) * sum_c logp - (lam - lam/C) * logp_y
    #   sum_c logp = sum_c (x - m) - C*lse,   logp_y = (x_y - m) - lse
    lam_f = jnp.float32(lam)
    lam_c = jnp.float32(lam / c)
    sum_logp = sum_xm - jnp.float32(c) * lse
    logp_y = xm_y - lse
    loss_ref[...] = -(lam_c * sum_logp) - (lam_f - lam_c) * logp_y


def label_smoothed_ce(x, y, lam: float = 0.9):
    n, c = x.shape
    itemsize = jnp.dtype(x.dtype).itemsize
    sublane_pack = 16 if itemsize == 2 else 8

    # VMEM capacity drives the block-byte target: 8 MiB blocks on 128 MiB parts
    # (v5e/v6e), 4 MiB on 64 MiB parts (v7x).  Fall back conservatively.
    try:
        info = pltpu.get_tpu_info()
        vmem_cap = int(getattr(info, "vmem_capacity_bytes", 64 * 1024 * 1024))
    except Exception:
        vmem_cap = 64 * 1024 * 1024
    target_block_bytes = (8 * 1024 * 1024 if vmem_cap >= 128 * 1024 * 1024
                          else 4 * 1024 * 1024)

    row_bytes = max(1, c * itemsize)
    target_rows = max(sublane_pack, target_block_bytes // row_bytes)
    tile_n = min(target_rows, _round_up(n, sublane_pack))
    tile_n = max(sublane_pack, (tile_n // sublane_pack) * sublane_pack)

    # Prefer >= 2 grid steps when N allows: v7x has 2 TensorCores and the "parallel"
    # row-tile axis is how work is sharded across them.
    if n > sublane_pack and tile_n >= _round_up(n, sublane_pack):
        tile_n = max(sublane_pack, _round_up((n + 1) // 2, sublane_pack))

    n_pad = _round_up(n, tile_n)
    if n_pad != n:
        x = jnp.pad(x, ((0, n_pad - n), (0, 0)))
        y = jnp.pad(y, (0, n_pad - n))
    y2 = y.reshape(n_pad, 1).astype(jnp.int32)

    grid = (n_pad // tile_n,)

    # Double-buffered x blocks + in-flight intermediates (xm, exp, mask) + headroom.
    block_bytes = tile_n * c * itemsize
    vmem_limit = min(vmem_cap - (16 << 20), 6 * block_bytes + (8 << 20))
    vmem_limit = max(vmem_limit, 16 << 20)

    out = pl.pallas_call(
        functools.partial(_label_smoothed_ce_kernel, lam=lam),
        out_shape=jax.ShapeDtypeStruct((n_pad, 1), jnp.float32),
        grid=grid,
        in_specs=[
            pl.BlockSpec((tile_n, c), lambda i: (i, 0)),
            pl.BlockSpec((tile_n, 1), lambda i: (i, 0)),
        ],
        out_specs=pl.BlockSpec((tile_n, 1), lambda i: (i, 0)),
        compiler_params=pltpu.CompilerParams(
            dimension_semantics=("parallel",),
            vmem_limit_bytes=int(vmem_limit),
        ),
    )(x, y2)

    # Drop padded rows, then mean as a sum times the compile-time constant 1/N.
    return jnp.sum(out[:n, 0]) * jnp.float32(1.0 / n)


def _reference(x, y, lam=0.9):
    n, c = x.shape
    logp = jax.nn.log_softmax(x.astype(jnp.float32), axis=1)
    w = jnp.full((n, c), lam / c, dtype=jnp.float32)
    w = w.at[jnp.arange(n), y].set(lam)
    return jnp.mean(jnp.sum(-logp * w, axis=1))


if __name__ == "__main__":
    key = jax.random.PRNGKey(0)
    k1, k2, k3, k4, k5, k6 = jax.random.split(key, 6)

    # Case 1: small, exact tile fit (f32).
    N1, C1 = 8, 32
    x1 = jax.random.normal(k1, (N1, C1), dtype=jnp.float32)
    y1 = jax.random.randint(k2, (N1,), 0, C1, dtype=jnp.int32)
    loss1 = label_smoothed_ce(x1, y1, lam=0.9)
    jax.block_until_ready(loss1)
    ref1 = _reference(x1, y1, lam=0.9)
    assert jnp.allclose(loss1, ref1, rtol=1e-5, atol=1e-5), (loss1, ref1)

    # Case 2: N not a multiple of the tile (exercises padding + multi-tile grid, f32).
    N2, C2 = 13, 128
    x2 = jax.random.normal(k3, (N2, C2), dtype=jnp.float32)
    y2 = jax.random.randint(k4, (N2,), 0, C2, dtype=jnp.int32)
    loss2 = label_smoothed_ce(x2, y2, lam=0.9)
    jax.block_until_ready(loss2)
    ref2 = _reference(x2, y2, lam=0.9)
    assert jnp.allclose(loss2, ref2, rtol=1e-5, atol=1e-5), (loss2, ref2)

    # Case 3: bf16 inputs stay bf16-resident in the kernel (padding + 2 tiles).
    N3, C3 = 48, 256
    x3 = jax.random.normal(k5, (N3, C3), dtype=jnp.float32).astype(jnp.bfloat16)
    y3 = jax.random.randint(k6, (N3,), 0, C3, dtype=jnp.int32)
    loss3 = label_smoothed_ce(x3, y3, lam=0.9)
    jax.block_until_ready(loss3)
    ref3 = _reference(x3, y3, lam=0.9)
    assert jnp.allclose(loss3, ref3, rtol=2e-2, atol=2e-2), (loss3, ref3)

    print("KERNEL_OK")
</pallas_src>

<mosaic_0001>
module attributes {stable_mosaic.version = 11 : i64} {
  func.func @_label_smoothed_ce_kernel(%arg0: i32, %arg1: memref<8x32xf32, #tpu.memory_space<vmem>>, %arg2: memref<8x1xi32, #tpu.memory_space<vmem>>, %arg3: memref<8x1xf32, #tpu.memory_space<vmem>>) attributes {dimension_semantics = [#tpu.dimension_semantics<parallel>], iteration_bounds = array<i64: 1>, scalar_prefetch = 0 : i64, scratch_operands = 0 : i64, tpu.core_type = #tpu.core_type<tc>, window_params = [{transform_indices = @transform_0, window_bounds = array<i64: 8, 32>}, {transform_indices = @transform_1, window_bounds = array<i64: 8, 1>}, {transform_indices = @transform_2, window_bounds = array<i64: 8, 1>}]} {
    %c0 = arith.constant 0 : index
    %c0_0 = arith.constant 0 : index
    %0 = vector.load %arg1[%c0, %c0_0] : memref<8x32xf32, #tpu.memory_space<vmem>>, vector<8x32xf32>
    %c0_1 = arith.constant 0 : index
    %c0_2 = arith.constant 0 : index
    %1 = vector.load %arg2[%c0_1, %c0_2] : memref<8x1xi32, #tpu.memory_space<vmem>>, vector<8x1xi32>
    %cst = arith.constant dense<0xFF800000> : vector<8xf32>
    %2 = vector.multi_reduction <maximumf>, %0, %cst [1] : vector<8x32xf32> to vector<8xf32>
    %3 = vector.shape_cast %2 : vector<8xf32> to vector<8x1xf32>
    %4 = vector.broadcast %3 : vector<8x1xf32> to vector<8x32xf32>
    %5 = arith.subf %0, %4 : vector<8x32xf32>
    %6 = tpu.iota {dimensions = array<i32: 1>} : vector<1x32xi32>
    %7 = vector.broadcast %6 : vector<1x32xi32> to vector<8x32xi32>
    %8 = vector.broadcast %1 : vector<8x1xi32> to vector<8x32xi32>
    %9 = arith.cmpi eq, %7, %8 : vector<8x32xi32>
    %10 = math.exp %5 : vector<8x32xf32>
    %cst_3 = arith.constant dense<0.000000e+00> : vector<8xf32>
    %11 = vector.multi_reduction <add>, %10, %cst_3 [1] : vector<8x32xf32> to vector<8xf32>
    %12 = vector.shape_cast %11 : vector<8xf32> to vector<8x1xf32>
    %cst_4 = arith.constant dense<0.000000e+00> : vector<8xf32>
    %13 = vector.multi_reduction <add>, %5, %cst_4 [1] : vector<8x32xf32> to vector<8xf32>
    %14 = vector.shape_cast %13 : vector<8xf32> to vector<8x1xf32>
    %c0_i32 = arith.constant 0 : i32
    %15 = arith.sitofp %c0_i32 : i32 to f32
    %16 = vector.broadcast %15 : f32 to vector<8x32xf32>
    %17 = arith.select %9, %5, %16 : vector<8x32xi1>, vector<8x32xf32>
    %cst_5 = arith.constant dense<0.000000e+00> : vector<8xf32>
    %18 = vector.multi_reduction <add>, %17, %cst_5 [1] : vector<8x32xf32> to vector<8xf32>
    %19 = vector.shape_cast %18 : vector<8xf32> to vector<8x1xf32>
    %20 = math.log %12 : vector<8x1xf32>
    %cst_6 = arith.constant 3.200000e+01 : f32
    %21 = vector.broadcast %cst_6 : f32 to vector<8x1xf32>
    %22 = arith.mulf %21, %20 : vector<8x1xf32>
    %23 = arith.subf %14, %22 : vector<8x1xf32>
    %24 = arith.subf %19, %20 : vector<8x1xf32>
    %cst_7 = arith.constant 2.812500e-02 : f32
    %25 = vector.broadcast %cst_7 : f32 to vector<8x1xf32>
    %26 = arith.mulf %25, %23 : vector<8x1xf32>
    %cst_8 = arith.constant 0.000000e+00 : f32
    %27 = vector.broadcast %cst_8 : f32 to vector<8x1xf32>
    %28 = arith.subf %27, %26 : vector<8x1xf32>
    %cst_9 = arith.constant 0.899999976 : f32
    %cst_10 = arith.constant 2.812500e-02 : f32
    %29 = arith.subf %cst_9, %cst_10 : f32
    %30 = vector.broadcast %29 : f32 to vector<8x1xf32>
    %31 = arith.mulf %30, %24 : vector<8x1xf32>
    %32 = arith.subf %28, %31 : vector<8x1xf32>
    %c0_11 = arith.constant 0 : index
    %c0_12 = arith.constant 0 : index
    %33 = vector.load %arg3[%c0_11, %c0_12] : memref<8x1xf32, #tpu.memory_space<vmem>>, vector<8x1xf32>
    tpu.vector_store %arg3[%c0_11, %c0_12], %32 {strides = array<i32>} : memref<8x1xf32, #tpu.memory_space<vmem>>, vector<8x1xf32>,
    return
  }
  func.func @transform_0(%arg0: i32) -> (i32, i32) {
    %c0_i32 = arith.constant 0 : i32
    %c0_i32_0 = arith.constant 0 : i32
    return %arg0, %c0_i32 : i32, i32
  }
  func.func @transform_1(%arg0: i32) -> (i32, i32) {
    %c0_i32 = arith.constant 0 : i32
    %c0_i32_0 = arith.constant 0 : i32
    return %arg0, %c0_i32 : i32, i32
  }
  func.func @transform_2(%arg0: i32) -> (i32, i32) {
    %c0_i32 = arith.constant 0 : i32
    %c0_i32_0 = arith.constant 0 : i32
    return %arg0, %c0_i32 : i32, i32
  }
}

</mosaic_0001>

<bundles_post_ra>
// kernel: tpu_custom_call.1
= control target key start
LH: loop header
LB: loop body
LE: loop exit
PB: predicated region body
PF: predicated region fallthrough
CT: control target
= control target key end

     0   :  { %vm13_vm0 = vcmask 261120   ;;  %v57_v1 = vmov 0   ;;  %v18_v7 = vlaneseq  ;;  %vm45_vm2 = vcmask 7168   ;;  %s86_s0 = inlined_call_operand.vmem [shape: f32[8,32], index: 0, kind: input, shape index: {}]   ;;  %s87_s1 = inlined_call_operand.vmem [shape: s32[8,1], index: 1, kind: input, shape index: {}]   ;;  %s88_s2 = inlined_call_operand.vmem [shape: f32[8,1], index: 2, kind: output, shape index: {}]  }
   0x1   :  { %v11_v0 = vld [vmem:[%s86_s0] sm:$0xff]  ;;  %52 = vset.pattern.permute.xlu0 %v57_v1 }
   0x2   :  { %v14_v2 = vsel %vm13_vm0, %v11_v0, -inf  ;;  %v12_v3 = vld [vmem:[%s87_s1] sm:$0xff]  ;;  %v19_v8 = vand.u32 127, %v18_v7 }
   0x3   :  { %15 = vmax.xlane.f32.xlu0 %v14_v2 }
  0x19   :  { %21 = vperm.xlu0 %52, %v12_v3  }
  0x8c   :  { %v16_v4 = vpop.xlane.xlu0 %15 }
  0x8d   :  { %v17_v5 = vsub.f32 %v11_v0, %v16_v4 }
  0x8f   :  { %v24_v6 = vmul.f32 1.442695, %v17_v5  ;;  %v29_v12 = vsel %vm13_vm0, %v17_v5, 0.0 }
  0x91   :  { %53 = vpow2.f32 %v24_v6 }
  0x94   :  { %v22_v10 = vpop.permute.xlu0 %21 }
  0x95   :  { %vm23_vm1 = vcmp.eq.s32.totalorder %v19_v8, %v22_v10 }
  0x96   :  { %v32_v13 = vsel %vm23_vm1, %v17_v5, 0.0 }
  0x97   :  { %v33_v14 = vsel %vm13_vm0, %v32_v13, 0.0 }
  0x9e   :  { %v54_v9 = vpop.eup %53 }
  0x9f   :  { %v26_v11 = vsel %vm13_vm0, %v54_v9, 0.0 }
  0xa0   :  { %27 = vadd.xlane.f32.xlu1 %v26_v11 }
  0xa4   :  { %30 = vadd.xlane.f32.xlu1 %v29_v12 }
  0xa8   :  { %34 = vadd.xlane.f32.xlu1 %v33_v14 }
 0x129   :  { %v28_v15 = vpop.xlane.xlu1 %27 }
 0x12a   :  { %55 = vlog2.f32 %v28_v15 }
 0x12d   :  { %v31_v16 = vpop.xlane.xlu1 %30 }
 0x131   :  { %v35_v20 = vpop.xlane.xlu1 %34 }
 0x137   :  { %v56_v17 = vpop.eup %55 }
 0x138   :  { %v37_v18 = vmul.f32 0.6931472, %v56_v17 }
 0x13a   :  { %v38_v19 = vmul.f32 32.0, %v37_v18  ;;  %v40_v22 = vsub.f32 %v35_v20, %v37_v18 }
 0x13c   :  { %v39_v21 = vsub.f32 %v31_v16, %v38_v19  ;;  %v43_v25 = vmul.f32 0.871875, %v40_v22 }
 0x13e   :  { %v41_v23 = vmul.f32 0.028125, %v39_v21 }
 0x140   :  { %v42_v24 = vsub.f32 0.0, %v41_v23 }
 0x142   :  { %v44_v26 = vsub.f32 %v42_v24, %v43_v25 }
 0x144   :  { %46 = vst.msk [vmem:[%s88_s2] sm:$0xff] %vm45_vm2, %v44_v26 }

</bundles_post_ra>
